<compile_context>
chip_gen: v5e
topology: v5e:2x2
jax: 0.10.0
libtpu: 0.0.40
codegen_flags: <defaults>
</compile_context>

<pallas_src>
import math

import jax
import jax.numpy as jnp
from jax import lax
from jax.experimental import pallas as pl
from jax.experimental.pallas import tpu as pltpu


def _lpe_kernel(x_ref, w_ref, p_ref, o_ref):
    # x_ref: (TILE_B, 1)  w_ref, p_ref: (1, W)  o_ref: (TILE_B, W),  W = 1 + dim.
    t = x_ref[...] * w_ref[...]          # (TILE_B, W) broadcast mul; col 0 -> x (w=1)
    s = jnp.sin(t + p_ref[...])          # single EUP sin covers both sin & cos halves
    col = lax.broadcasted_iota(jnp.int32, s.shape, 1)
    # Column 0 keeps the raw time value x; all other columns take sin(t + phase).
    o_ref[...] = jnp.where(col == 0, t, s).astype(o_ref.dtype)


def learned_positional_embedding(x: jax.Array, weights: jax.Array,
                                 *, tile_b: int | None = None) -> jax.Array:
    """x: (B,) float, weights: (half_dim,) float -> (B, 1 + 2*half_dim) float32."""
    assert x.ndim == 1
    assert weights.ndim == 1
    b = x.shape[0]
    half_dim = weights.shape[0]
    w_cols = 1 + 2 * half_dim

    if tile_b is None:
        # Large B: big tiles so the ~0.35 us per-grid-step overhead is amortized
        # over MBs of output.  Small/medium B: a single tile rounded up to the
        # f32 sublane multiple of 8.  (For very wide dims, shrink tile_b so the
        # double-buffered, lane-padded tiles stay inside v7x's scoped VMEM.)
        tile_b = 4096 if b >= 4096 else max(8, ((b + 7) // 8) * 8)
    n_tiles = pl.cdiv(b, tile_b)

    x2 = x.astype(jnp.float32).reshape(b, 1)
    w2pi = weights.astype(jnp.float32) * (2.0 * math.pi)
    # w_packed = [1 | 2*pi*w | 2*pi*w], phase = [0 | 0..0 | pi/2..pi/2].
    w_packed = jnp.concatenate(
        [jnp.ones((1,), jnp.float32), w2pi, w2pi]).reshape(1, w_cols)
    phase = jnp.concatenate(
        [jnp.zeros((1 + half_dim,), jnp.float32),
         jnp.full((half_dim,), 0.5 * math.pi, jnp.float32)]).reshape(1, w_cols)

    # Honest accounting; this kernel is step-overhead / store bound at small dims.
    cost = pl.CostEstimate(
        flops=3 * b * w_cols,             # mul + add + select
        transcendentals=b * w_cols,       # one sin per output element
        bytes_accessed=4 * (b + 2 * w_cols + b * w_cols),
    )

    return pl.pallas_call(
        _lpe_kernel,
        out_shape=jax.ShapeDtypeStruct((b, w_cols), jnp.float32),
        grid=(n_tiles,),
        in_specs=[
            pl.BlockSpec((tile_b, 1), lambda i: (i, 0)),
            pl.BlockSpec((1, w_cols), lambda i: (0, 0)),   # packed weights: fetched once
            pl.BlockSpec((1, w_cols), lambda i: (0, 0)),   # phase row: fetched once
        ],
        out_specs=pl.BlockSpec((tile_b, w_cols), lambda i: (i, 0)),
        compiler_params=pltpu.CompilerParams(
            # Batch tiles are independent.  On v7x, pltpu.CORE_PARALLEL (with
            # n_tiles >= 2) is the knob that actually splits across the 2 TCs.
            dimension_semantics=("parallel",),
        ),
        cost_estimate=cost,
    )(x2, w_packed, phase)


def reference(x: jax.Array, weights: jax.Array) -> jax.Array:
    xb = x.reshape(-1, 1).astype(jnp.float32)
    freqs = xb * weights.reshape(1, -1).astype(jnp.float32) * 2.0 * math.pi
    return jnp.concatenate([xb, jnp.sin(freqs), jnp.cos(freqs)], axis=-1)


if __name__ == "__main__":
    key = jax.random.PRNGKey(0)
    k_x, k_w = jax.random.split(key)

    dim = 32                      # module hidden dim (must be even)
    half_dim = dim // 2
    batch = 8                     # continuous-time scalars, one per batch element

    # Deterministic "parameter" init (mirrors torch.randn(half_dim)).
    weights = jax.random.normal(k_w, (half_dim,), dtype=jnp.float32)
    # Continuous time values in [0, 1).
    x = jax.random.uniform(k_x, (batch,), dtype=jnp.float32)

    out = jax.block_until_ready(learned_positional_embedding(x, weights))
    ref = reference(x, weights)
    assert out.shape == (batch, 1 + dim), out.shape
    assert jnp.allclose(out, ref, atol=1e-5, rtol=1e-5), float(
        jnp.max(jnp.abs(out - ref)))

    # Masked trailing block path (batch not a multiple of 8; no wrapper padding).
    x_odd = jax.random.uniform(jax.random.PRNGKey(1), (13,), dtype=jnp.float32)
    out_odd = jax.block_until_ready(learned_positional_embedding(x_odd, weights))
    ref_odd = reference(x_odd, weights)
    assert out_odd.shape == (13, 1 + dim), out_odd.shape
    assert jnp.allclose(out_odd, ref_odd, atol=1e-5, rtol=1e-5), float(
        jnp.max(jnp.abs(out_odd - ref_odd)))

    # Multi-tile grid path (forced small tile, non-divisible batch).
    x_mt = jax.random.uniform(jax.random.PRNGKey(2), (40,), dtype=jnp.float32)
    out_mt = jax.block_until_ready(
        learned_positional_embedding(x_mt, weights, tile_b=16))
    ref_mt = reference(x_mt, weights)
    assert out_mt.shape == (40, 1 + dim), out_mt.shape
    assert jnp.allclose(out_mt, ref_mt, atol=1e-5, rtol=1e-5), float(
        jnp.max(jnp.abs(out_mt - ref_mt)))

    print("KERNEL_OK")
</pallas_src>

<mosaic_0001>
module attributes {stable_mosaic.version = 11 : i64} {
  func.func @_lpe_kernel(%arg0: i32, %arg1: memref<8x1xf32, #tpu.memory_space<vmem>>, %arg2: memref<1x33xf32, #tpu.memory_space<vmem>>, %arg3: memref<1x33xf32, #tpu.memory_space<vmem>>, %arg4: memref<8x33xf32, #tpu.memory_space<vmem>>) attributes {dimension_semantics = [#tpu.dimension_semantics<parallel>], iteration_bounds = array<i64: 1>, scalar_prefetch = 0 : i64, scratch_operands = 0 : i64, tpu.core_type = #tpu.core_type<tc>, window_params = [{transform_indices = @transform_0, window_bounds = array<i64: 8, 1>}, {pipeline_mode = #tpu.pipeline_mode<synchronous>, transform_indices = @transform_1, window_bounds = array<i64: 1, 33>}, {pipeline_mode = #tpu.pipeline_mode<synchronous>, transform_indices = @transform_2, window_bounds = array<i64: 1, 33>}, {transform_indices = @transform_3, window_bounds = array<i64: 8, 33>}]} {
    %c0 = arith.constant 0 : index
    %c0_0 = arith.constant 0 : index
    %0 = vector.load %arg1[%c0, %c0_0] : memref<8x1xf32, #tpu.memory_space<vmem>>, vector<8x1xf32>
    %c0_1 = arith.constant 0 : index
    %c0_2 = arith.constant 0 : index
    %1 = vector.load %arg2[%c0_1, %c0_2] : memref<1x33xf32, #tpu.memory_space<vmem>>, vector<1x33xf32>
    %2 = vector.broadcast %0 : vector<8x1xf32> to vector<8x33xf32>
    %3 = vector.broadcast %1 : vector<1x33xf32> to vector<8x33xf32>
    %4 = arith.mulf %2, %3 : vector<8x33xf32>
    %c0_3 = arith.constant 0 : index
    %c0_4 = arith.constant 0 : index
    %5 = vector.load %arg3[%c0_3, %c0_4] : memref<1x33xf32, #tpu.memory_space<vmem>>, vector<1x33xf32>
    %6 = vector.broadcast %5 : vector<1x33xf32> to vector<8x33xf32>
    %7 = arith.addf %4, %6 : vector<8x33xf32>
    %8 = math.sin %7 : vector<8x33xf32>
    %9 = tpu.iota {dimensions = array<i32: 1>} : vector<8x33xi32>
    %c0_i32 = arith.constant 0 : i32
    %10 = vector.broadcast %c0_i32 : i32 to vector<8x33xi32>
    %11 = arith.cmpi eq, %9, %10 : vector<8x33xi32>
    %12 = arith.select %11, %4, %8 : vector<8x33xi1>, vector<8x33xf32>
    %c0_5 = arith.constant 0 : index
    %c0_6 = arith.constant 0 : index
    %13 = vector.load %arg4[%c0_5, %c0_6] : memref<8x33xf32, #tpu.memory_space<vmem>>, vector<8x33xf32>
    tpu.vector_store %arg4[%c0_5, %c0_6], %12 {strides = array<i32>} : memref<8x33xf32, #tpu.memory_space<vmem>>, vector<8x33xf32>,
    return
  }
  func.func @transform_0(%arg0: i32) -> (i32, i32) {
    %c0_i32 = arith.constant 0 : i32
    %c0_i32_0 = arith.constant 0 : i32
    return %arg0, %c0_i32 : i32, i32
  }
  func.func @transform_1(%arg0: i32) -> (i32, i32) {
    %c0_i32 = arith.constant 0 : i32
    %c0_i32_0 = arith.constant 0 : i32
    %c0_i32_1 = arith.constant 0 : i32
    return %c0_i32, %c0_i32_0 : i32, i32
  }
  func.func @transform_2(%arg0: i32) -> (i32, i32) {
    %c0_i32 = arith.constant 0 : i32
    %c0_i32_0 = arith.constant 0 : i32
    %c0_i32_1 = arith.constant 0 : i32
    return %c0_i32, %c0_i32_0 : i32, i32
  }
  func.func @transform_3(%arg0: i32) -> (i32, i32) {
    %c0_i32 = arith.constant 0 : i32
    %c0_i32_0 = arith.constant 0 : i32
    return %arg0, %c0_i32 : i32, i32
  }
}

</mosaic_0001>

<bundles_post_ra>
// kernel: tpu_custom_call.1
= control target key start
LH: loop header
LB: loop body
LE: loop exit
PB: predicated region body
PF: predicated region fallthrough
CT: control target
= control target key end

     0   :  { %v248_v1 = vmov 0   ;;  %s353_s0 = inlined_call_operand.vmem [shape: f32[8,1], index: 0, kind: input, shape index: {}]   ;;  %s354_s1 = inlined_call_operand.vmem [shape: f32[1,33], index: 1, kind: input, shape index: {}]   ;;  %s355_s2 = inlined_call_operand.vmem [shape: f32[1,33], index: 2, kind: input, shape index: {}]   ;;  %s356_s3 = inlined_call_operand.hbm [shape: f32[8,33], index: 3, kind: output, shape index: {}]  }
   0x1   :  { %v15_v0 = vld [vmem:[%s353_s0] sm:$0xff]  ;;  %219 = vset.pattern.permute.xlu0 %v248_v1 }
   0x2   :  { %19 = vperm.xlu0 %219, %v15_v0  }
   0x3   :  { %8 = vsyncpa [#allocation3], 0  ;;  %v220_v2 = vld [vmem:[%s354_s1] ss:$0 sm:$0xff]  ;;  %v249_v18 = vmov 683565275  }
   0x4   :  { %v221_v3 = vld [vmem:[%s355_s2] ss:$0 sm:$0xff]  ;;  %v250_v20 = vmov 2475754826   ;;  %v251_v23 = vmov 2131351028  }
   0x5   :  { %v252_v26 = vmov 2102212464   ;;  %v253_v29 = vmov 920167782   ;;  %v254_v32 = vmov 1326507024  }
   0x6   :  { %s255_s0 = smov [#allocation2]   ;;  %s199_s19 = sshll.u32 %s356_s3, 4  ;;  %s200_s19 = int_to_ptr.hbm [resolvable:$true] %s199_s19 }
   0x7   :  { %s197_s1 = sshll.u32 %s255_s0, 4  ;;  %s198_s1 = int_to_ptr.vmem [resolvable:$true] %s197_s1 }
  0x74   :  { %v20_v4 = vpop.permute.xlu0 %19 }
  0x75   :  { %v286_v5 = vmul.f32 %v220_v2, %v20_v4 }
  0x77   :  { %v289_v6 = vadd.f32 %v221_v3, %v286_v5 }
  0x79   :  { %v34_v7 = vand.u32 2139095040, %v289_v6  ;;  %v31_v10 = vand.u32 2147483647, %v289_v6  ;;  %vm33_vm12 = vcmp.lt.s32.totalorder %v289_v6, 0 }
  0x7b   :  { %v35_v8 = vshrl.u32 %v34_v7, 23  ;;  %v38_v12 = vand.u32 8388607, %v31_v10  ;;  %vm32_vm13 = vcmp.le.f32.partialorder %v31_v10, 0.7853982 }
  0x7d   :  { %v208_v9 = vadd.s32 4294967169, %v35_v8  ;;  %v39_v16 = vor.u32 8388608, %v38_v12 }
  0x7f   :  { %v41_v11 = vadd.s32 1, %v208_v9  ;;  %v306_v39 = vshll.u32 %v39_v16, 8 }
  0x81   :  { %vm42_vm0 = vcmp.gt.s32.totalorder %v41_v11, 0  ;;  %v80_v48 = vand.u32 65535, %v306_v39  ;;  %v81_v49 = vshrl.u32 %v306_v39, 16 }
  0x82   :  { %v43_v13 = vsel %vm42_vm0, %v41_v11, 0 }
  0x83   :  { %v45_v14 = vand.u32 31, %v43_v13  ;;  %v297_v17 = vshrl.u32 %v43_v13, 5 }
  0x85   :  { %v295_v15 = vsub.s32 32, %v45_v14  ;;  %v48_v19 = vshll.u32 %v249_v18, %v45_v14  ;;  %v51_v21 = vshll.u32 %v250_v20, %v45_v14  ;;  %v54_v25 = vshll.u32 %v251_v23, %v45_v14 }
  0x86   :  { %v57_v28 = vshll.u32 %v252_v26, %v45_v14  ;;  %v60_v31 = vshll.u32 %v253_v29, %v45_v14  ;;  %vm63_vm1 = vcmp.lt.s32.totalorder %v297_v17, 1  ;;  %vm66_vm2 = vcmp.lt.s32.totalorder %v297_v17, 4 }
  0x87   :  { %v49_v22 = vshrl.u32 %v250_v20, %v295_v15  ;;  %v52_v24 = vshrl.u32 %v251_v23, %v295_v15  ;;  %v55_v27 = vshrl.u32 %v252_v26, %v295_v15  ;;  %v58_v30 = vshrl.u32 %v253_v29, %v295_v15 }
  0x88   :  { %v61_v33 = vshrl.u32 %v254_v32, %v295_v15  ;;  %vm65_vm3 = vcmp.lt.s32.totalorder %v297_v17, 3  ;;  %vm64_vm4 = vcmp.lt.s32.totalorder %v297_v17, 2  ;;  %v47_v14 = vshrl.u32 %v249_v18, %v295_v15 }
  0x89   :  { %v50_v34 = vor.u32 %v49_v22, %v48_v19  ;;  %v53_v35 = vor.u32 %v52_v24, %v51_v21  ;;  %v56_v36 = vor.u32 %v55_v27, %v54_v25  ;;  %v59_v37 = vor.u32 %v58_v30, %v57_v28 }
  0x8a   :  { %v62_v38 = vor.u32 %v61_v33, %v60_v31 }
  0x8b   :  { %v71_v40 = vsel %vm63_vm1, %v50_v34, %v53_v35  ;;  %v75_v41 = vsel %vm63_vm1, %v53_v35, %v56_v36  ;;  %v72_v42 = vsel %vm66_vm2, %v59_v37, 920167782  ;;  %v68_v11 = vsel %vm66_vm2, %v56_v36, 2102212464 }
  0x8c   :  { %v76_v43 = vsel %vm66_vm2, %v62_v38, 1326507024  ;;  %v73_v44 = vsel %vm65_vm3, %v56_v36, %v72_v42  ;;  %v67_v23 = vsel %vm63_vm1, %v47_v14, %v50_v34  ;;  %v69_v24 = vsel %vm65_vm3, %v53_v35, %v68_v11 }
  0x8d   :  { %v77_v45 = vsel %vm65_vm3, %v59_v37, %v76_v43  ;;  %v74_v46 = vsel %vm64_vm4, %v71_v40, %v73_v44  ;;  %v70_v15 = vsel %vm64_vm4, %v67_v23, %v69_v24  ;;  %vm174_vm2 = vweird.f32 %v289_v6 }
  0x8e   :  { %v78_v47 = vsel %vm64_vm4, %v75_v41, %v77_v45  ;;  %v104_v52 = vand.u32 65535, %v74_v46  ;;  %v105_v53 = vshrl.u32 %v74_v46, 16  ;;  %v124_v31 = vmul.u32 %v306_v39, %v70_v15 }
  0x8f   :  { %v82_v50 = vand.u32 65535, %v78_v47  ;;  %v83_v51 = vshrl.u32 %v78_v47, 16  ;;  %vm190_vm3 = vcmask 269312  }
  0x90   :  { %v107_v56 = vmul.u32 %v105_v53, %v80_v48  ;;  %v108_v57 = vmul.u32 %v104_v52, %v81_v49  ;;  %v106_v61 = vmul.u32 %v104_v52, %v80_v48  ;;  %v109_v2 = vmul.u32 %v105_v53, %v81_v49 }
  0x91   :  { %v85_v54 = vmul.u32 %v83_v51, %v80_v48  ;;  %v86_v55 = vmul.u32 %v82_v50, %v81_v49  ;;  %v84_v58 = vmul.u32 %v82_v50, %v80_v48  ;;  %v87_v60 = vmul.u32 %v83_v51, %v81_v49 }
  0x92   :  { %v110_v62 = vshll.u32 %v107_v56, 16  ;;  %v112_v4 = vshll.u32 %v108_v57, 16  ;;  %v111_v21 = vshrl.u32 %v107_v56, 16  ;;  %v113_v27 = vshrl.u32 %v108_v57, 16 }
  0x93   :  { %v88_v59 = vshll.u32 %v85_v54, 16  ;;  %v90_v63 = vshll.u32 %v86_v55, 16  ;;  %v89_v16 = vshrl.u32 %v85_v54, 16  ;;  %v91_v25 = vshrl.u32 %v86_v55, 16 }
  0x94   :  { %vm114_vm6 = vc.u32 %v106_v61, %v110_v62  ;;  %v116_v7 = vadd.s32 %v110_v62, %v106_v61 }
  0x95   :  { %vm92_vm5 = vc.u32 %v84_v58, %v88_v59  ;;  %v94_v0 = vadd.s32 %v88_v59, %v84_v58  ;;  %v115_v9 = vsel %vm114_vm6, 1, %v248_v1 }
  0x96   :  { %v93_v3 = vsel %vm92_vm5, 1, %v248_v1  ;;  %v117_v13 = vadd.s32 %v115_v9, %v109_v2  ;;  %vm118_vm8 = vc.u32 %v116_v7, %v112_v4  ;;  %v120_v30 = vadd.s32 %v116_v7, %v112_v4 }
  0x97   :  { %v95_v8 = vadd.s32 %v93_v3, %v87_v60  ;;  %vm96_vm7 = vc.u32 %v94_v0, %v90_v63  ;;  %v119_v20 = vsel %vm118_vm8, 1, %v248_v1 }
  0x98   :  { %v97_v12 = vsel %vm96_vm7, 1, %v248_v1  ;;  %v121_v22 = vadd.s32 %v119_v20, %v117_v13 }
  0x99   :  { %v99_v19 = vadd.s32 %v97_v12, %v95_v8  ;;  %v186_v12 = vlaneseq }
  0x9a   :  { %v122_v28 = vadd.s32 %v121_v22, %v111_v21 }
  0x9b   :  { %v100_v26 = vadd.s32 %v99_v19, %v89_v16  ;;  %v187_v20 = vand.u32 127, %v186_v12 }
  0x9c   :  { %v123_v18 = vadd.s32 %v122_v28, %v113_v27 }
  0x9d   :  { %v101_v29 = vadd.s32 %v100_v26, %v91_v25  ;;  %vm188_vm1 = vcmp.eq.s32.totalorder %v187_v20, 0 }
  0x9e   :  { %v127_v1 = vadd.s32 1, %v123_v18 }
  0x9f   :  { %vm126_vm9 = vc.u32 %v101_v29, %v120_v30  ;;  %v125_v17 = vadd.s32 %v120_v30, %v101_v29 }
  0xa0   :  { %v128_v32 = vsel %vm126_vm9, %v127_v1, %v123_v18 }
  0xa1   :  { %v129_v33 = vadd.s32 %v128_v32, %v124_v31 }
  0xa3   :  { %v130_v34 = vadd.s32 536870912, %v129_v33 }
  0xa5   :  { %v131_v36 = vshrl.u32 %v130_v34, 30 }
  0xa7   :  { %v132_v37 = vshll.u32 %v131_v36, 30  ;;  %v155_v57 = vsub.s32 4, %v131_v36 }
  0xa9   :  { %v133_v35 = vsub.s32 %v129_v33, %v132_v37  ;;  %v156_v61 = vsel %vm33_vm12, %v155_v57, %v131_v36 }
  0xaa   :  { %v158_v0 = vsel %vm32_vm13, 0, %v156_v61 }
  0xab   :  { %vm134_vm10 = vcmp.lt.s32.totalorder %v133_v35, 0  ;;  %v135_v38 = vsub.s32 0, %v133_v35  ;;  %v175_v8 = vadd.s32 3, %v158_v0 }
  0xad   :  { %v136_v40 = vsel %vm134_vm10, %v135_v38, %v133_v35  ;;  %v176_v14 = vand.u32 3, %v175_v8 }
  0xae   :  { %v137_v41 = vclz %v136_v40 }
  0xaf   :  { %vm178_vm14 = vcmp.eq.s32.totalorder %v176_v14, 0  ;;  %vm181_vm15 = vcmp.eq.s32.totalorder %v176_v14, 2  ;;  %vm177_vm0 = vcmp.lt.s32.totalorder %v176_v14, 2 }
  0xb0   :  { %v209_v42 = vadd.s32 4294967294, %v137_v41 }
  0xb2   :  { %vm210_vm11 = vcmp.lt.s32.totalorder %v209_v42, 0 }
  0xb3   :  { %v140_v43 = vsel %vm210_vm11, 0, %v209_v42 }
  0xb4   :  { %v141_v44 = vsub.s32 32, %v140_v43  ;;  %v145_v45 = vsub.s32 4294967266, %v140_v43  ;;  %v142_v46 = vshll.u32 %v133_v35, %v140_v43 }
  0xb6   :  { %v143_v47 = vshrl.u32 %v125_v17, %v141_v44  ;;  %v146_v48 = vadd.s32 127, %v145_v45 }
  0xb8   :  { %v144_v39 = vor.u32 %v143_v47, %v142_v46  ;;  %v147_v49 = vshll.u32 %v146_v48, 23 }
  0xba   :  { %v148_v50 = vor.u32 4788187, %v147_v49  ;;  %v151_v52 = vcvt.s32.f32 %v144_v39 }
  0xbc   :  { %v149_v51 = vand.u32 2147483647, %v148_v50 }
  0xbe   :  { %v152_v53 = vmul.f32 %v151_v52, %v149_v51 }
  0xc0   :  { %v153_v54 = vxor.u32 2147483648, %v152_v53 }
  0xc2   :  { %v154_v55 = vsel %vm33_vm12, %v153_v54, %v152_v53 }
  0xc3   :  { %v157_v56 = vsel %vm32_vm13, %v289_v6, %v154_v55 }
  0xc4   :  { %v159_v58 = vmul.f32 %v157_v56, %v157_v56 }
  0xc6   :  { %v160_v59 = vmul.f32 -0.001358992, %v159_v58  ;;  %v167_v60 = vmul.f32 -0.00019511016, %v159_v58 }
  0xc8   :  { %v161_v62 = vadd.f32 0.041655596, %v160_v59  ;;  %v168_v63 = vadd.f32 0.008332121, %v167_v60 }
  0xca   :  { %v162_v2 = vmul.f32 %v161_v62, %v159_v58  ;;  %v169_v3 = vmul.f32 %v168_v63, %v159_v58 }
  0xcc   :  { %v163_v4 = vadd.f32 -0.4999988, %v162_v2  ;;  %v170_v7 = vadd.f32 -0.16666654, %v169_v3 }
  0xce   :  { %v164_v9 = vmul.f32 %v163_v4, %v159_v58  ;;  %v171_v11 = vmul.f32 %v170_v7, %v159_v58 }
  0xd0   :  { %v165_v10 = vadd.f32 1.0, %v164_v9  ;;  %v172_v13 = vadd.f32 1.0, %v171_v11 }
  0xd2   :  { %v173_v16 = vmul.f32 %v172_v13, %v157_v56  ;;  %v182_v19 = vxor.u32 2147483648, %v165_v10 }
  0xd4   :  { %v179_v21 = vxor.u32 2147483648, %v173_v16  ;;  %v183_v23 = vsel %vm181_vm15, %v182_v19, %v173_v16 }
  0xd6   :  { %v180_v22 = vsel %vm178_vm14, %v165_v10, %v179_v21 }
  0xd7   :  { %v184_v24 = vsel %vm177_vm0, %v180_v22, %v183_v23 }
  0xd8   :  { %v185_v25 = vsel %vm174_vm2, nan, %v184_v24 }
  0xd9   :  { %v189_v26 = vsel %vm188_vm1, %v286_v5, %v185_v25 }
  0xda   :  { %191 = vst.msk [vmem:[#allocation2] sm:$0xff] %vm190_vm3, %v189_v26 }
  0xdb   :  { %202 = dma.vmem_to_hbm [thread:$0]  %s198_s1, 128, %s200_s19, [#allocation3]  }
  0xdc   :  { %246 = dma.done.wait [#allocation3], 128  }
  0xdd   :  { %247 = vsyncadd [#allocation3], 4294967168 }
  0xde   :  { %207 = vsyncpa [#allocation3], 1 }

</bundles_post_ra>
